<compile_context>
chip_gen: v7x
topology: tpu7x:2x2x1
jax: 0.10.0
libtpu: 0.0.40
codegen_flags: <defaults>
</compile_context>

<pallas_src>
import jax
import jax.numpy as jnp
from jax.experimental import pallas as pl
from jax.experimental.pallas import tpu as pltpu


def _cdiv(a, b):
    return -(-a // b)


def _round_up(a, b):
    return _cdiv(a, b) * b


def _num_tensorcores():
    """Best-effort TensorCores-per-device: 2 on v7x, 1 on v5e/v6e/others."""
    try:
        kind = jax.devices()[0].device_kind.lower()
    except Exception:
        return 1
    if "v7" in kind or "tpu7" in kind:
        return 2
    return 1


def _make_sums_kernel(tile_rows, width, blocks_per_core, total_rows, ragged):
    """Accumulate vector partial sums of the four BalanceLoss reductions.

    out_ref is a resident (1, 4, 8, width) fp32 accumulator (one per core):
      [0]: sum(pred * gt * mask)   (dice intersection)
      [1]: sum(pred * mask)
      [2]: sum(gt * mask)          (== positive.sum())
      [3]: sum(mask)               (negative.sum() = [3] - [2])
    Per-step work is pure VPU (vreg-vreg mul/add); the single cross-lane
    collapse of the (8, width) partials happens once in the wrapper.
    """

    def kernel(pred_ref, gt_ref, mask_ref, out_ref):
        i = pl.program_id(1)

        @pl.when(i == 0)
        def _():
            out_ref[...] = jnp.zeros_like(out_ref)

        p = pred_ref[...].astype(jnp.float32)
        g = gt_ref[...].astype(jnp.float32)
        m = mask_ref[...].astype(jnp.float32)

        if ragged:
            # Final (and any per-core overrun) block reads rows past the logical
            # end of the array; those contents are undefined, so fold a validity
            # mask into `m` so they contribute zero to every sum.
            c = pl.program_id(0)
            row0 = (c * blocks_per_core + i) * tile_rows
            rows = jax.lax.broadcasted_iota(jnp.int32, (tile_rows, width), 0) + row0
            m = jnp.where(rows < total_rows, m, 0.0)

        pm = p * m
        gm = g * m

        def fold(x):
            # (T, W) -> (T//8, 8, W) splits the sublane-major axis only (no
            # relayout); the sum over axis 0 is pure vreg-vreg VPU adds -> (8, W).
            return jnp.sum(x.reshape(tile_rows // 8, 8, width), axis=0)

        out_ref[0, 0] += fold(pm * g)
        out_ref[0, 1] += fold(pm)
        out_ref[0, 2] += fold(gm)
        out_ref[0, 3] += fold(m)

    return kernel


def _global_sums(pred2, gt2, mask2):
    """Stream pred/gt/mask once from HBM; return the 4 global sums (fp32)."""
    width = pred2.shape[-1]
    rows = pred2.size // width

    # Merging leading dims keeps the (8,128)-tiled HBM layout -> free reshape.
    # (The old pad-to-512-lanes path rewrote + re-read every array.)
    p2 = pred2.reshape(rows, width)
    g2 = gt2.reshape(rows, width)
    m2 = mask2.reshape(rows, width)

    ncores = _num_tensorcores()

    # Tile sizing: ~6 MiB of input blocks per grid step (~12 MiB double-buffered
    # across the 3 streams) to amortize per-step pipeline overhead.  Rows are a
    # multiple of 32 so bf16/int8 gt/mask inputs remain layout-legal.
    lanes_pad = _round_up(width, 128)  # VMEM lane padding for narrow widths
    bytes_per_row = lanes_pad * (p2.dtype.itemsize + g2.dtype.itemsize +
                                 m2.dtype.itemsize)
    tile_rows = max(32, ((6 << 20) // bytes_per_row // 32) * 32)
    tile_rows = min(tile_rows, _round_up(rows, 32))

    num_blocks = _cdiv(rows, tile_rows)
    blocks_per_core = _cdiv(num_blocks, ncores)
    ragged = (rows % tile_rows != 0) or (ncores * blocks_per_core != num_blocks)

    if ncores * blocks_per_core == num_blocks:
        def in_idx(c, i):
            return (c * blocks_per_core + i, 0)
    else:
        last_block = num_blocks - 1

        def in_idx(c, i):
            # Clamp overrun steps onto the last valid block; their nominal rows
            # are all >= `rows`, so the in-kernel validity mask zeroes them.
            return (jnp.minimum(c * blocks_per_core + i, last_block), 0)

    in_spec = pl.BlockSpec((tile_rows, width), in_idx)
    out_spec = pl.BlockSpec((1, 4, 8, width), lambda c, i: (c, 0, 0, 0))

    # v7x: CORE_PARALLEL actually splits the leading axis across both
    # TensorCores; single-TC chips use ncores == 1 (no rounding waste, no
    # second partial-sum row).
    core_sem = (getattr(pltpu, "CORE_PARALLEL", "parallel")
                if ncores > 1 else "arbitrary")

    partials = pl.pallas_call(
        _make_sums_kernel(tile_rows, width, blocks_per_core, rows, ragged),
        out_shape=jax.ShapeDtypeStruct((ncores, 4, 8, width), jnp.float32),
        grid_spec=pltpu.PrefetchScalarGridSpec(
            num_scalar_prefetch=0,
            grid=(ncores, blocks_per_core),
            in_specs=[in_spec, in_spec, in_spec],
            out_specs=out_spec),
        compiler_params=pltpu.CompilerParams(
            dimension_semantics=(core_sem, "arbitrary"),
            vmem_limit_bytes=32 * 1024 * 1024),
    )(p2, g2, m2)

    # Single cheap cross-lane collapse of the tiny resident accumulators.
    return jnp.sum(partials, axis=(0, 2, 3))  # (4,)


def balance_loss_pallas(pred, gt, mask, *, negative_ratio=3, eps=1e-6,
                        balance_loss=True, return_origin=False,
                        assume_binary_maps=True):
    """BalanceLoss(main_loss_type='DiceLoss') forward pass.

    assume_binary_maps=True uses the exact closed form of the descending top-k
    for 0/1 gt & mask (the DB shrink maps); it relies on DiceLoss >= 0 for
    inputs in [0,1].  Set False for the general (soft-valued gt) path.
    """
    if pred.ndim == 4:
        assert pred.shape[1] == 1
        pred2 = pred[:, 0]
        gt2 = gt[:, 0]
    else:
        pred2, gt2 = pred, gt
    mask2 = mask[:, 0] if mask.ndim == 4 else mask
    assert pred2.shape == gt2.shape == mask2.shape

    sums = _global_sums(pred2, gt2, mask2)
    intersection = sums[0]       # sum(pred*gt*mask)
    pred_mask_sum = sums[1]      # sum(pred*mask)
    positive_sum = sums[2]       # sum(gt*mask)
    mask_sum = sums[3]           # sum(mask)
    negative_sum = mask_sum - positive_sum   # sum((1-gt)*mask)

    # DiceLoss (scalar): 1 - 2*I / (sum(pred*mask) + sum(gt*mask) + eps)
    loss = 1.0 - 2.0 * intersection / (pred_mask_sum + positive_sum + eps)

    if not balance_loss:
        return loss

    # torch int(...) truncates; sums are nonnegative so astype(int32) matches
    # (fp32 accumulation order may differ from torch by ulps on huge maps).
    positive_count = positive_sum.astype(jnp.int32)
    negative_count = jnp.minimum(
        negative_sum,
        (positive_count * negative_ratio).astype(jnp.float32)).astype(jnp.int32)

    positive_loss_sum = positive_sum * loss   # sum(positive * loss), loss scalar

    if assume_binary_maps:
        # Binary gt/mask: negative = (1-gt)*mask is 0/1 and negative_count <=
        # #ones, so the descending top-k of negative*loss is exactly
        # negative_count copies of `loss`.  No sort, no negative-map writeback.
        topk_negative_loss_sum = negative_count.astype(jnp.float32) * loss
    else:
        # General soft-valued path (matches torch for arbitrary gt/mask).
        # TODO(synk): descending sort + dynamic-k top-k has no clean in-kernel
        # Mosaic primitive; it stays in plain JAX glue.
        neg = ((1.0 - gt2.astype(jnp.float32)) *
               mask2.astype(jnp.float32)).reshape(-1)
        sorted_desc = -jnp.sort(-neg)
        k_idx = jnp.arange(sorted_desc.shape[0], dtype=jnp.int32)
        topk_negative_loss_sum = jnp.sum(
            jnp.where(k_idx < negative_count, sorted_desc, 0.0)) * loss

    pos_c = positive_count.astype(jnp.float32)
    neg_c = negative_count.astype(jnp.float32)
    balanced = jnp.where(
        negative_count > 0,
        (positive_loss_sum + topk_negative_loss_sum) / (pos_c + neg_c + eps),
        positive_loss_sum / (pos_c + eps))

    if return_origin:
        return balanced, loss
    return balanced


if __name__ == "__main__":
    key = jax.random.PRNGKey(0)
    k1, k2, k3 = jax.random.split(key, 3)
    N, C, H, W = 2, 1, 16, 16

    pred = jax.random.uniform(k1, (N, C, H, W), dtype=jnp.float32)
    gt = (jax.random.uniform(k2, (N, C, H, W)) > 0.7).astype(jnp.float32)
    mask = (jax.random.uniform(k3, (N, H, W)) > 0.1).astype(jnp.float32)

    out = jax.jit(balance_loss_pallas)(pred, gt, mask)
    jax.block_until_ready(out)
    print("KERNEL_OK")
</pallas_src>

<mosaic_0001>
module attributes {stable_mosaic.version = 11 : i64} {
  func.func @kernel(%arg0: i32, %arg1: i32, %arg2: memref<32x16xf32, #tpu.memory_space<vmem>>, %arg3: memref<32x16xf32, #tpu.memory_space<vmem>>, %arg4: memref<32x16xf32, #tpu.memory_space<vmem>>, %arg5: memref<1x4x8x16xf32, #tpu.memory_space<vmem>>) attributes {dimension_semantics = [#tpu.dimension_semantics<arbitrary>, #tpu.dimension_semantics<arbitrary>], iteration_bounds = array<i64: 1, 1>, scalar_prefetch = 0 : i64, scratch_operands = 0 : i64, tpu.core_type = #tpu.core_type<tc>, window_params = [{transform_indices = @transform_0, window_bounds = array<i64: 32, 16>}, {transform_indices = @transform_1, window_bounds = array<i64: 32, 16>}, {transform_indices = @transform_2, window_bounds = array<i64: 32, 16>}, {transform_indices = @transform_3, window_bounds = array<i64: 1, 4, 8, 16>}]} {
    %c0_i32 = arith.constant 0 : i32
    %0 = arith.cmpi eq, %arg1, %c0_i32 : i32
    %1 = arith.extui %0 : i1 to i32
    %c0_i32_0 = arith.constant 0 : i32
    %2 = arith.cmpi ne, %1, %c0_i32_0 : i32
    scf.if %2 {
      %cst_38 = arith.constant 0.000000e+00 : f32
      %41 = vector.broadcast %cst_38 : f32 to vector<1x4x8x16xf32>
      %c0_39 = arith.constant 0 : index
      %c0_40 = arith.constant 0 : index
      %c0_41 = arith.constant 0 : index
      %c0_42 = arith.constant 0 : index
      %42 = vector.load %arg5[%c0_39, %c0_40, %c0_41, %c0_42] : memref<1x4x8x16xf32, #tpu.memory_space<vmem>>, vector<1x4x8x16xf32>
      tpu.vector_store %arg5[%c0_39, %c0_40, %c0_41, %c0_42], %41 {strides = array<i32>} : memref<1x4x8x16xf32, #tpu.memory_space<vmem>>, vector<1x4x8x16xf32>,
    } else {
    }
    %c0 = arith.constant 0 : index
    %c0_1 = arith.constant 0 : index
    %3 = vector.load %arg2[%c0, %c0_1] : memref<32x16xf32, #tpu.memory_space<vmem>>, vector<32x16xf32>
    %c0_2 = arith.constant 0 : index
    %c0_3 = arith.constant 0 : index
    %4 = vector.load %arg3[%c0_2, %c0_3] : memref<32x16xf32, #tpu.memory_space<vmem>>, vector<32x16xf32>
    %c0_4 = arith.constant 0 : index
    %c0_5 = arith.constant 0 : index
    %5 = vector.load %arg4[%c0_4, %c0_5] : memref<32x16xf32, #tpu.memory_space<vmem>>, vector<32x16xf32>
    %6 = arith.mulf %3, %5 : vector<32x16xf32>
    %7 = arith.mulf %4, %5 : vector<32x16xf32>
    %c0_6 = arith.constant 0 : index
    %c0_7 = arith.constant 0 : index
    %c0_8 = arith.constant 0 : index
    %c0_9 = arith.constant 0 : index
    %8 = vector.load %arg5[%c0_6, %c0_7, %c0_8, %c0_9] : memref<1x4x8x16xf32, #tpu.memory_space<vmem>>, vector<1x1x8x16xf32>
    %9 = vector.shape_cast %8 : vector<1x1x8x16xf32> to vector<8x16xf32>
    %10 = arith.mulf %6, %4 : vector<32x16xf32>
    %11 = vector.shape_cast %10 : vector<32x16xf32> to vector<4x8x16xf32>
    %cst = arith.constant dense<0.000000e+00> : vector<8x16xf32>
    %12 = vector.multi_reduction <add>, %11, %cst [0] : vector<4x8x16xf32> to vector<8x16xf32>
    %13 = arith.addf %9, %12 : vector<8x16xf32>
    %c0_10 = arith.constant 0 : index
    %c0_11 = arith.constant 0 : index
    %c0_12 = arith.constant 0 : index
    %c0_13 = arith.constant 0 : index
    %14 = vector.load %arg5[%c0_10, %c0_11, %c0_12, %c0_13] : memref<1x4x8x16xf32, #tpu.memory_space<vmem>>, vector<1x1x8x16xf32>
    %15 = vector.shape_cast %14 : vector<1x1x8x16xf32> to vector<8x16xf32>
    %16 = vector.shape_cast %13 : vector<8x16xf32> to vector<1x1x8x16xf32>
    tpu.vector_store %arg5[%c0_10, %c0_11, %c0_12, %c0_13], %16 {strides = array<i32>} : memref<1x4x8x16xf32, #tpu.memory_space<vmem>>, vector<1x1x8x16xf32>,
    %c0_14 = arith.constant 0 : index
    %c1 = arith.constant 1 : index
    %c0_15 = arith.constant 0 : index
    %c0_16 = arith.constant 0 : index
    %17 = vector.load %arg5[%c0_14, %c1, %c0_15, %c0_16] : memref<1x4x8x16xf32, #tpu.memory_space<vmem>>, vector<1x1x8x16xf32>
    %18 = vector.shape_cast %17 : vector<1x1x8x16xf32> to vector<8x16xf32>
    %19 = vector.shape_cast %6 : vector<32x16xf32> to vector<4x8x16xf32>
    %cst_17 = arith.constant dense<0.000000e+00> : vector<8x16xf32>
    %20 = vector.multi_reduction <add>, %19, %cst_17 [0] : vector<4x8x16xf32> to vector<8x16xf32>
    %21 = arith.addf %18, %20 : vector<8x16xf32>
    %c0_18 = arith.constant 0 : index
    %c1_19 = arith.constant 1 : index
    %c0_20 = arith.constant 0 : index
    %c0_21 = arith.constant 0 : index
    %22 = vector.load %arg5[%c0_18, %c1_19, %c0_20, %c0_21] : memref<1x4x8x16xf32, #tpu.memory_space<vmem>>, vector<1x1x8x16xf32>
    %23 = vector.shape_cast %22 : vector<1x1x8x16xf32> to vector<8x16xf32>
    %24 = vector.shape_cast %21 : vector<8x16xf32> to vector<1x1x8x16xf32>
    tpu.vector_store %arg5[%c0_18, %c1_19, %c0_20, %c0_21], %24 {strides = array<i32>} : memref<1x4x8x16xf32, #tpu.memory_space<vmem>>, vector<1x1x8x16xf32>,
    %c0_22 = arith.constant 0 : index
    %c2 = arith.constant 2 : index
    %c0_23 = arith.constant 0 : index
    %c0_24 = arith.constant 0 : index
    %25 = vector.load %arg5[%c0_22, %c2, %c0_23, %c0_24] : memref<1x4x8x16xf32, #tpu.memory_space<vmem>>, vector<1x1x8x16xf32>
    %26 = vector.shape_cast %25 : vector<1x1x8x16xf32> to vector<8x16xf32>
    %27 = vector.shape_cast %7 : vector<32x16xf32> to vector<4x8x16xf32>
    %cst_25 = arith.constant dense<0.000000e+00> : vector<8x16xf32>
    %28 = vector.multi_reduction <add>, %27, %cst_25 [0] : vector<4x8x16xf32> to vector<8x16xf32>
    %29 = arith.addf %26, %28 : vector<8x16xf32>
    %c0_26 = arith.constant 0 : index
    %c2_27 = arith.constant 2 : index
    %c0_28 = arith.constant 0 : index
    %c0_29 = arith.constant 0 : index
    %30 = vector.load %arg5[%c0_26, %c2_27, %c0_28, %c0_29] : memref<1x4x8x16xf32, #tpu.memory_space<vmem>>, vector<1x1x8x16xf32>
    %31 = vector.shape_cast %30 : vector<1x1x8x16xf32> to vector<8x16xf32>
    %32 = vector.shape_cast %29 : vector<8x16xf32> to vector<1x1x8x16xf32>
    tpu.vector_store %arg5[%c0_26, %c2_27, %c0_28, %c0_29], %32 {strides = array<i32>} : memref<1x4x8x16xf32, #tpu.memory_space<vmem>>, vector<1x1x8x16xf32>,
    %c0_30 = arith.constant 0 : index
    %c3 = arith.constant 3 : index
    %c0_31 = arith.constant 0 : index
    %c0_32 = arith.constant 0 : index
    %33 = vector.load %arg5[%c0_30, %c3, %c0_31, %c0_32] : memref<1x4x8x16xf32, #tpu.memory_space<vmem>>, vector<1x1x8x16xf32>
    %34 = vector.shape_cast %33 : vector<1x1x8x16xf32> to vector<8x16xf32>
    %35 = vector.shape_cast %5 : vector<32x16xf32> to vector<4x8x16xf32>
    %cst_33 = arith.constant dense<0.000000e+00> : vector<8x16xf32>
    %36 = vector.multi_reduction <add>, %35, %cst_33 [0] : vector<4x8x16xf32> to vector<8x16xf32>
    %37 = arith.addf %34, %36 : vector<8x16xf32>
    %c0_34 = arith.constant 0 : index
    %c3_35 = arith.constant 3 : index
    %c0_36 = arith.constant 0 : index
    %c0_37 = arith.constant 0 : index
    %38 = vector.load %arg5[%c0_34, %c3_35, %c0_36, %c0_37] : memref<1x4x8x16xf32, #tpu.memory_space<vmem>>, vector<1x1x8x16xf32>
    %39 = vector.shape_cast %38 : vector<1x1x8x16xf32> to vector<8x16xf32>
    %40 = vector.shape_cast %37 : vector<8x16xf32> to vector<1x1x8x16xf32>
    tpu.vector_store %arg5[%c0_34, %c3_35, %c0_36, %c0_37], %40 {strides = array<i32>} : memref<1x4x8x16xf32, #tpu.memory_space<vmem>>, vector<1x1x8x16xf32>,
    return
  }
  func.func @transform_0(%arg0: i32, %arg1: i32) -> (i32, i32) {
    %c1_i32 = arith.constant 1 : i32
    %0 = arith.muli %arg0, %c1_i32 : i32
    %1 = arith.addi %0, %arg1 : i32
    %c0_i32 = arith.constant 0 : i32
    %c0_i32_0 = arith.constant 0 : i32
    return %1, %c0_i32 : i32, i32
  }
  func.func @transform_1(%arg0: i32, %arg1: i32) -> (i32, i32) {
    %c1_i32 = arith.constant 1 : i32
    %0 = arith.muli %arg0, %c1_i32 : i32
    %1 = arith.addi %0, %arg1 : i32
    %c0_i32 = arith.constant 0 : i32
    %c0_i32_0 = arith.constant 0 : i32
    return %1, %c0_i32 : i32, i32
  }
  func.func @transform_2(%arg0: i32, %arg1: i32) -> (i32, i32) {
    %c1_i32 = arith.constant 1 : i32
    %0 = arith.muli %arg0, %c1_i32 : i32
    %1 = arith.addi %0, %arg1 : i32
    %c0_i32 = arith.constant 0 : i32
    %c0_i32_0 = arith.constant 0 : i32
    return %1, %c0_i32 : i32, i32
  }
  func.func @transform_3(%arg0: i32, %arg1: i32) -> (i32, i32, i32, i32) {
    %c0_i32 = arith.constant 0 : i32
    %c0_i32_0 = arith.constant 0 : i32
    %c0_i32_1 = arith.constant 0 : i32
    %c0_i32_2 = arith.constant 0 : i32
    return %arg0, %c0_i32, %c0_i32_0, %c0_i32_1 : i32, i32, i32, i32
  }
}

</mosaic_0001>

<bundles_post_ra>
// kernel: balance_loss_pallas.1
= control target key start
LH: loop header
LB: loop body
LE: loop exit
PB: predicated region body
PF: predicated region fallthrough
CT: control target
= control target key end

     0   :  { %8 = vsyncpa [#allocation3], 0  ;;  %s376_s0 = inlined_call_operand.hbm [shape: f32[32,16], index: 0, kind: input, shape index: {}]   ;;  %s377_s1 = inlined_call_operand.hbm [shape: f32[32,16], index: 1, kind: input, shape index: {}]   ;;  %s378_s2 = inlined_call_operand.hbm [shape: f32[32,16], index: 2, kind: input, shape index: {}]   ;;  %s379_s3 = inlined_call_operand.vmem [shape: f32[1,4,8,16], index: 3, kind: output, shape index: {}]  }
   0x1   :  { %9 = vsyncpa [#allocation5], 0  ;;  %s238_s12 = smov [#allocation4]   ;;  %s239_s14 = smov [#allocation2]  }
   0x2   :  { %s35_s13 = sshll.u32 %s238_s12, 4  ;;  %s19_s15 = sshll.u32 %s239_s14, 4  ;;  %s36_s13 = int_to_ptr.vmem [resolvable:$true] %s35_s13  ;;  %s264_s15 = int_to_ptr.vmem [resolvable:$true] %s19_s15 }
   0x3   :  { %s168_s18 = scalar_lea.hbm %s377_s1, 512 }
   0x4   :  { %p169_p0 = scmp.ne.s32.totalorder %s377_s1, %s168_s18  ;;  %p172_p1 = scmp.lt.u32.totalorder %s168_s18, %s377_s1 }
   0x6   :  { %p174_p2 = pnand %p172_p1, %p169_p0 }
   0x8   :  { %177 = shalt.err (!%p174_p2)
}
   0x9   :  { %s178_s23 = scalar_lea.vmem %s36_s13, 512  ;;  %p183_p4 = scmp.lt.s32.totalorder %s36_s13, %s36_s13 }
   0xa   :  { %p179_p3 = scmp.ne.s32.totalorder %s36_s13, %s178_s23  ;;  %p184_p5 = scmp.lt.s32.totalorder %s178_s23, %s178_s23 }
   0xc   :  { %p185_p6 = por %p184_p5, %p183_p4 }
   0xe   :  { %p186_p7 = pnand %p185_p6, %p179_p3 }
  0x10   :  { %189 = shalt.err (!%p186_p7)
}
  0x11   :  { %s240_s24 = smov 128   ;;  %s241_s25 = smov 8  }
  0x12   :  { %41 = dma.hbm_to_vmem [thread:$0]  %s377_s1, 512, %s36_s13, [#allocation5], %s240_s24, %s240_s24, %s241_s25  }
  0x13   :  { %s190_s30 = scalar_lea.hbm %s376_s0, 512 }
  0x14   :  { %p191_p8 = scmp.ne.s32.totalorder %s376_s0, %s190_s30  ;;  %p194_p9 = scmp.lt.u32.totalorder %s190_s30, %s376_s0 }
  0x16   :  { %p196_p10 = pnand %p194_p9, %p191_p8 }
  0x18   :  { %199 = shalt.err (!%p196_p10)
}
  0x19   :  { %s200_s8 = scalar_lea.vmem %s264_s15, 512  ;;  %p205_p12 = scmp.lt.s32.totalorder %s264_s15, %s264_s15 }
  0x1a   :  { %p201_p11 = scmp.ne.s32.totalorder %s264_s15, %s200_s8  ;;  %p206_p13 = scmp.lt.s32.totalorder %s200_s8, %s200_s8 }
  0x1c   :  { %p207_p0 = por %p206_p13, %p205_p12 }
  0x1e   :  { %p208_p1 = pnand %p207_p0, %p201_p11 }
  0x20   :  { %211 = shalt.err (!%p208_p1)
}
  0x21   :  { %25 = dma.hbm_to_vmem [thread:$0]  %s376_s0, 512, %s264_s15, [#allocation3], %s240_s24, %s240_s24, %s241_s25  }
  0x22   :  { %s242_s10 = smov [#allocation6]   ;;  %s212_s14 = scalar_lea.hbm %s378_s2, 512 }
  0x23   :  { %s51_s11 = sshll.u32 %s242_s10, 4  ;;  %p213_p2 = scmp.ne.s32.totalorder %s378_s2, %s212_s14  ;;  %s52_s11 = int_to_ptr.vmem [resolvable:$true] %s51_s11 }
  0x24   :  { %p216_p3 = scmp.lt.u32.totalorder %s212_s14, %s378_s2 }
  0x26   :  { %p218_p4 = pnand %p216_p3, %p213_p2 }
  0x28   :  { %221 = shalt.err (!%p218_p4)
}
  0x29   :  { %s222_s20 = scalar_lea.vmem %s52_s11, 512  ;;  %p227_p6 = scmp.lt.s32.totalorder %s52_s11, %s52_s11 }
  0x2a   :  { %p223_p5 = scmp.ne.s32.totalorder %s52_s11, %s222_s20  ;;  %p228_p7 = scmp.lt.s32.totalorder %s222_s20, %s222_s20 }
  0x2c   :  { %p229_p8 = por %p228_p7, %p227_p6 }
  0x2e   :  { %p230_p9 = pnand %p229_p8, %p223_p5 }
  0x30   :  { %233 = shalt.err (!%p230_p9)
}
  0x31   :  { %57 = dma.hbm_to_vmem [thread:$0]  %s378_s2, 512, %s52_s11, [#allocation5], %s240_s24, %s240_s24, %s241_s25  }
  0x32   :  { %234 = dma.done.wait [#allocation3], 512  }
  0x33   :  { %235 = vsyncadd [#allocation3], 4294966784 }
  0x34   :  { %236 = dma.done.wait [#allocation5], 1024  }
  0x35   :  { %237 = vsyncadd [#allocation5], 4294966272  ;;  %vm77_vm0 = vcmask 130048   ;;  %v243_v0 = vmov 0.0   ;;  %v82_v1 = vld [vmem:[#allocation2] sm:$0xff]  ;;  %v83_v2 = vld [vmem:[#allocation2 + $0x8] sm:$0xff] }
  0x36   :  { %78 = vst.msk [vmem:[%s379_s3] sm:$0xff] %vm77_vm0, %v243_v0  ;;  %79 = vst.msk [vmem:[%s379_s3 + $0x8] sm:$0xff] %vm77_vm0, %v243_v0  ;;  %v84_v3 = vld [vmem:[#allocation2 + $0x10] sm:$0xff]  ;;  %v85_v4 = vld [vmem:[#allocation2 + $0x18] sm:$0xff] }
  0x37   :  { %80 = vst.msk [vmem:[%s379_s3 + $0x10] sm:$0xff] %vm77_vm0, %v243_v0  ;;  %81 = vst.msk [vmem:[%s379_s3 + $0x18] sm:$0xff] %vm77_vm0, %v243_v0  ;;  %v86_v5 = vld [vmem:[#allocation4] sm:$0xff]  ;;  %v87_v6 = vld [vmem:[#allocation4 + $0x8] sm:$0xff] }
  0x38   :  { %v88_v7 = vld [vmem:[#allocation4 + $0x10] sm:$0xff]  ;;  %v89_v8 = vld [vmem:[#allocation4 + $0x18] sm:$0xff]  ;;  %v90_v9 = vld [vmem:[#allocation6] sm:$0xff] }
  0x39   :  { %v91_v10 = vld [vmem:[#allocation6 + $0x8] sm:$0xff]  ;;  %v92_v11 = vld [vmem:[#allocation6 + $0x10] sm:$0xff]  ;;  %v93_v12 = vld [vmem:[#allocation6 + $0x18] sm:$0xff]  ;;  %v94_v13 = vmul.f32 %v90_v9, %v82_v1  ;;  %v98_v14 = vmul.f32 %v90_v9, %v86_v5  ;;  %v141_v18 = vsel %vm77_vm0, %v90_v9, 0.0 }
  0x3a   :  { %v95_v15 = vmul.f32 %v91_v10, %v83_v2  ;;  %v96_v16 = vmul.f32 %v92_v11, %v84_v3  ;;  %v97_v17 = vmul.f32 %v93_v12, %v85_v4  ;;  %v99_v21 = vmul.f32 %v91_v10, %v87_v6 }
  0x3b   :  { %v103_v19 = vmul.f32 %v94_v13, %v86_v5  ;;  %v119_v20 = vsel %vm77_vm0, %v94_v13, 0.0  ;;  %v100_v22 = vmul.f32 %v92_v11, %v88_v7  ;;  %v101_v30 = vmul.f32 %v93_v12, %v89_v8 }
  0x3c   :  { %v104_v23 = vmul.f32 %v95_v15, %v87_v6  ;;  %v105_v24 = vmul.f32 %v96_v16, %v88_v7  ;;  %v106_v25 = vmul.f32 %v97_v17, %v89_v8  ;;  %v120_v26 = vsel %vm77_vm0, %v95_v15, 0.0 }
  0x3d   :  { %v108_v27 = vsel %vm77_vm0, %v103_v19, 0.0  ;;  %v121_v28 = vadd.f32 %v120_v26, %v119_v20  ;;  %v122_v29 = vsel %vm77_vm0, %v96_v16, 0.0  ;;  %v124_v33 = vsel %vm77_vm0, %v97_v17, 0.0  ;;  %v156_v40 = vld [vmem:[%s379_s3 + $0x8] sm:$0xff]  ;;  %v102_v48 = vld [vmem:[%s379_s3] sm:$0xff] }
  0x3e   :  { %v109_v31 = vsel %vm77_vm0, %v104_v23, 0.0  ;;  %v111_v32 = vsel %vm77_vm0, %v105_v24, 0.0  ;;  %v130_v34 = vsel %vm77_vm0, %v98_v14, 0.0  ;;  %v131_v37 = vsel %vm77_vm0, %v99_v21, 0.0  ;;  %v158_v53 = vld [vmem:[%s379_s3 + $0x10] sm:$0xff]  ;;  %v160_v56 = vld [vmem:[%s379_s3 + $0x18] sm:$0xff] }
  0x3f   :  { %v110_v35 = vadd.f32 %v109_v31, %v108_v27  ;;  %v123_v36 = vadd.f32 %v122_v29, %v121_v28  ;;  %v133_v38 = vsel %vm77_vm0, %v100_v22, 0.0  ;;  %v113_v39 = vsel %vm77_vm0, %v106_v25, 0.0 }
  0x40   :  { %v132_v41 = vadd.f32 %v131_v37, %v130_v34  ;;  %v142_v42 = vsel %vm77_vm0, %v91_v10, 0.0  ;;  %v144_v43 = vsel %vm77_vm0, %v92_v11, 0.0  ;;  %v135_v46 = vsel %vm77_vm0, %v101_v30, 0.0 }
  0x41   :  { %v112_v44 = vadd.f32 %v111_v32, %v110_v35  ;;  %v125_v45 = vadd.f32 %v124_v33, %v123_v36  ;;  %v143_v47 = vadd.f32 %v142_v42, %v141_v18  ;;  %v146_v50 = vsel %vm77_vm0, %v93_v12, 0.0 }
  0x42   :  { %v134_v49 = vadd.f32 %v133_v38, %v132_v41 }
  0x43   :  { %v114_v51 = vadd.f32 %v113_v39, %v112_v44  ;;  %v126_v52 = vadd.f32 %v156_v40, %v125_v45  ;;  %v145_v54 = vadd.f32 %v144_v43, %v143_v47 }
  0x44   :  { %v136_v55 = vadd.f32 %v135_v46, %v134_v49 }
  0x45   :  { %v115_v57 = vadd.f32 %v114_v51, %v102_v48  ;;  %157 = vst.msk [vmem:[%s379_s3 + $0x8] sm:$0xff] %vm77_vm0, %v126_v52  ;;  %v147_v58 = vadd.f32 %v146_v50, %v145_v54 }
  0x46   :  { %v137_v59 = vadd.f32 %v158_v53, %v136_v55 }
  0x47   :  { %116 = vst.msk [vmem:[%s379_s3] sm:$0xff] %vm77_vm0, %v115_v57  ;;  %v148_v60 = vadd.f32 %v160_v56, %v147_v58 }
  0x48   :  { %159 = vst.msk [vmem:[%s379_s3 + $0x10] sm:$0xff] %vm77_vm0, %v137_v59 }
  0x49   :  { %161 = vst.msk [vmem:[%s379_s3 + $0x18] sm:$0xff] %vm77_vm0, %v148_v60 }
  0x4a   :  { %154 = vsyncpa [#allocation3], 1 }
  0x4b   :  { %155 = vsyncpa [#allocation5], 1 }

</bundles_post_ra>
